<compile_context>
chip_gen: v5e
topology: v5e:2x2
jax: 0.10.0
libtpu: 0.0.40
codegen_flags: <defaults>
</compile_context>

<pallas_src>
import functools
import math

import jax
import jax.numpy as jnp
from jax import lax
from jax.experimental import pallas as pl
from jax.experimental.pallas import tpu as pltpu


def _pick_seq_tile(p):
    """Query-sequence tile: prefer 128, must divide P (sublane dim: mult of 8 or full)."""
    if p <= 128:
        return p
    for t in (128, 64, 32, 16, 8):
        if p % t == 0:
            return t
    return p


def _pick_mlp_tile(d_mlp):
    """d_mlp reduction tile: prefer 512 (256-aligned for v6e/v7x MXU), must divide d_mlp."""
    if d_mlp <= 512:
        return d_mlp
    for t in (512, 256, 128):
        if d_mlp % t == 0:
            return t
    return d_mlp


def _transformer_block_kernel(xq_ref, xkv_ref, wq_ref, wk_ref, wv_ref, wo_ref,
                              win_ref, bin_ref, wout_ref, bout_ref,
                              o_ref,
                              x1_ref, acc_ref,
                              *, num_heads, d_head):
    """Grid = (batch, q_tile, mlp_tile).  Attention runs once per (b, q_tile) on the
    first mlp step; the MLP reduction accumulates over mlp tiles into acc_ref."""
    k_step = pl.program_id(2)
    n_k = pl.num_programs(2)

    # ---------------- Attention (only on the first d_mlp step) ----------------
    @pl.when(k_step == 0)
    def _attention():
        xq = xq_ref[0]                                # (TILE_P, D) f32
        xkv = xkv_ref[0]                              # (P, D)      f32
        xq_bf = xq.astype(jnp.bfloat16)
        xkv_bf = xkv.astype(jnp.bfloat16)

        # Fused head projections: one big matmul each (scale already folded into W_Q).
        q = jnp.dot(xq_bf, wq_ref[...], preferred_element_type=jnp.float32)    # (TILE_P, H*dh)
        kproj = jnp.dot(xkv_bf, wk_ref[...], preferred_element_type=jnp.float32)  # (P, H*dh)
        vproj = jnp.dot(xkv_bf, wv_ref[...], preferred_element_type=jnp.float32)  # (P, H*dh)

        contract_last = (((1,), (1,)), ((), ()))
        z_parts = []
        for h in range(num_heads):                    # static unrolled loop (scores only)
            lo = h * d_head
            qh = q[:, lo:lo + d_head].astype(jnp.bfloat16)
            kh = kproj[:, lo:lo + d_head].astype(jnp.bfloat16)
            vh = vproj[:, lo:lo + d_head].astype(jnp.bfloat16)

            # scores[q, p] = q_h[q] . k_h[p]   (scale folded into W_Q upstream)
            s = lax.dot_general(qh, kh, contract_last,
                                preferred_element_type=jnp.float32)  # (TILE_P, P) f32
            s_max = jnp.max(s, axis=-1, keepdims=True)
            p_exp = jnp.exp(s - s_max)
            denom = jnp.sum(p_exp, axis=-1, keepdims=True)
            attn = p_exp * pl.reciprocal(denom, approx=True)

            z_parts.append(jnp.dot(attn.astype(jnp.bfloat16), vh,
                                   preferred_element_type=jnp.float32))  # (TILE_P, dh)

        # Single fused output projection: (TILE_P, H*dh) @ (H*dh, D)
        z = jnp.concatenate(z_parts, axis=-1)
        attn_out = jnp.dot(z.astype(jnp.bfloat16), wo_ref[...],
                           preferred_element_type=jnp.float32)           # (TILE_P, D)

        x1_ref[...] = xq + attn_out                   # residual 1 (f32)
        acc_ref[...] = jnp.zeros_like(acc_ref)

    # ---------------- MLP (accumulated over d_mlp tiles) ----------------
    x1 = x1_ref[...]                                  # (TILE_P, D) f32
    h_pre = jnp.dot(x1.astype(jnp.bfloat16), win_ref[...],
                    preferred_element_type=jnp.float32) + bin_ref[...]    # (TILE_P, TILE_M)
    h_act = jnp.maximum(h_pre, 0.0)                   # act_fn = ReLU
    acc_ref[...] += jnp.dot(h_act.astype(jnp.bfloat16), wout_ref[...],
                            preferred_element_type=jnp.float32)           # (TILE_P, D)

    @pl.when(k_step == n_k - 1)
    def _finalize():
        o_ref[0] = (x1_ref[...] + acc_ref[...] + bout_ref[...]).astype(o_ref.dtype)


def transformer_block(x, params, *, num_heads, d_head):
    """x: (B, P, D) float32.  params: dict of weights (see init_params)."""
    B, P, D = x.shape
    H = num_heads
    HDH = H * d_head
    d_mlp = params["W_in"].shape[0]

    TILE_P = _pick_seq_tile(P)
    TILE_M = _pick_mlp_tile(d_mlp)
    n_q = P // TILE_P
    n_k = d_mlp // TILE_M

    inv_sqrt_dh = 1.0 / math.sqrt(d_head)

    # Pre-transpose weights so every in-kernel matmul is (M,K)x(K,N); cast to bf16.
    wq = (params["W_Q"].reshape(HDH, D).T * inv_sqrt_dh).astype(jnp.bfloat16)  # (D, H*dh)
    wk = params["W_K"].reshape(HDH, D).T.astype(jnp.bfloat16)                  # (D, H*dh)
    wv = params["W_V"].reshape(HDH, D).T.astype(jnp.bfloat16)                  # (D, H*dh)
    wo = params["W_O"].T.astype(jnp.bfloat16)                                  # (H*dh, D)
    win = params["W_in"].T.astype(jnp.bfloat16)                                # (D, d_mlp)
    wout = params["W_out"].T.astype(jnp.bfloat16)                              # (d_mlp, D)
    b_in = params["b_in"].reshape(1, d_mlp).astype(jnp.float32)
    b_out = params["b_out"].reshape(1, D).astype(jnp.float32)

    kernel = functools.partial(_transformer_block_kernel,
                               num_heads=num_heads, d_head=d_head)

    # NOTE: K/V still use the full sequence per q-tile; a full flash-style variant would
    # stream K/V tiles with an online softmax (not needed at these sizes).
    return pl.pallas_call(
        kernel,
        out_shape=jax.ShapeDtypeStruct((B, P, D), jnp.float32),
        grid_spec=pltpu.PrefetchScalarGridSpec(
            num_scalar_prefetch=0,
            grid=(B, n_q, n_k),
            in_specs=[
                pl.BlockSpec((1, TILE_P, D), lambda b, qi, k: (b, qi, 0)),  # x (query tile)
                pl.BlockSpec((1, P, D),      lambda b, qi, k: (b, 0, 0)),   # x (keys/values)
                pl.BlockSpec((D, HDH),       lambda b, qi, k: (0, 0)),      # W_Q^T (scaled)
                pl.BlockSpec((D, HDH),       lambda b, qi, k: (0, 0)),      # W_K^T
                pl.BlockSpec((D, HDH),       lambda b, qi, k: (0, 0)),      # W_V^T
                pl.BlockSpec((HDH, D),       lambda b, qi, k: (0, 0)),      # W_O^T
                pl.BlockSpec((D, TILE_M),    lambda b, qi, k: (0, k)),      # W_in^T tile
                pl.BlockSpec((1, TILE_M),    lambda b, qi, k: (0, k)),      # b_in tile
                pl.BlockSpec((TILE_M, D),    lambda b, qi, k: (k, 0)),      # W_out^T tile
                pl.BlockSpec((1, D),         lambda b, qi, k: (0, 0)),      # b_out
            ],
            out_specs=pl.BlockSpec((1, TILE_P, D), lambda b, qi, k: (b, qi, 0)),
            scratch_shapes=[
                pltpu.VMEM((TILE_P, D), jnp.float32),   # x1 (attention + residual)
                pltpu.VMEM((TILE_P, D), jnp.float32),   # MLP accumulator
            ],
        ),
        compiler_params=pltpu.CompilerParams(
            dimension_semantics=("parallel", "parallel", "arbitrary"),
            vmem_limit_bytes=64 * 1024 * 1024,
        ),
    )(x, x, wq, wk, wv, wo, win, b_in, wout, b_out)


def init_params(key, d_model, d_mlp, d_head, num_heads):
    ks = jax.random.split(key, 6)
    scale = 1.0 / math.sqrt(d_model)
    return {
        "W_K": jax.random.normal(ks[0], (num_heads, d_head, d_model), jnp.float32) * scale,
        "W_Q": jax.random.normal(ks[1], (num_heads, d_head, d_model), jnp.float32) * scale,
        "W_V": jax.random.normal(ks[2], (num_heads, d_head, d_model), jnp.float32) * scale,
        "W_O": jax.random.normal(ks[3], (d_model, d_head * num_heads), jnp.float32) * scale,
        "W_in": jax.random.normal(ks[4], (d_mlp, d_model), jnp.float32) * scale,
        "b_in": jnp.zeros((d_mlp,), jnp.float32),
        "W_out": jax.random.normal(ks[5], (d_model, d_mlp), jnp.float32) * scale,
        "b_out": jnp.zeros((d_model,), jnp.float32),
    }


def reference_block(x, params, *, num_heads, d_head):
    """Pure-JAX f32 reference mirroring the PyTorch module exactly."""
    k = jnp.einsum("ihd,bpd->biph", params["W_K"], x)
    q = jnp.einsum("ihd,bpd->biph", params["W_Q"], x)
    v = jnp.einsum("ihd,bpd->biph", params["W_V"], x)
    scores = jnp.einsum("biph,biqh->biqp", k, q) / math.sqrt(d_head)
    attn = jax.nn.softmax(scores, axis=-1)
    z = jnp.einsum("biph,biqp->biqh", v, attn)          # (b, i, q, h)
    b_, i_, q_, h_ = z.shape
    z_flat = jnp.transpose(z, (0, 2, 1, 3)).reshape(b_, q_, i_ * h_)
    attn_out = jnp.einsum("df,bqf->bqd", params["W_O"], z_flat)
    x1 = x + attn_out
    h = jnp.einsum("md,bpd->bpm", params["W_in"], x1) + params["b_in"]
    h = jnp.maximum(h, 0.0)
    mlp_out = jnp.einsum("dm,bpm->bpd", params["W_out"], h) + params["b_out"]
    return x1 + mlp_out


if __name__ == "__main__":
    B, P = 2, 8          # batch, num_ctx
    d_model, d_mlp = 32, 64
    num_heads, d_head = 4, 8

    key = jax.random.PRNGKey(0)
    kx, kp = jax.random.split(key)
    x = jax.random.normal(kx, (B, P, d_model), jnp.float32)
    params = init_params(kp, d_model, d_mlp, d_head, num_heads)

    out = transformer_block(x, params, num_heads=num_heads, d_head=d_head)
    out = jax.block_until_ready(out)

    ref = reference_block(x, params, num_heads=num_heads, d_head=d_head)
    assert out.shape == (B, P, d_model)
    # bf16 matmul inputs (f32 accumulation) -> tolerance loosened vs. pure-f32 reference.
    max_err = jnp.max(jnp.abs(out - ref))
    assert jnp.allclose(out, ref, atol=5e-2, rtol=5e-2), f"max abs err {max_err}"

    print("KERNEL_OK")
</pallas_src>

<mosaic_0001>
module attributes {stable_mosaic.version = 11 : i64} {
  func.func @_transformer_block_kernel(%arg0: i32, %arg1: i32, %arg2: i32, %arg3: memref<1x8x32xf32, #tpu.memory_space<vmem>>, %arg4: memref<1x8x32xf32, #tpu.memory_space<vmem>>, %arg5: memref<32x32xbf16, #tpu.memory_space<vmem>>, %arg6: memref<32x32xbf16, #tpu.memory_space<vmem>>, %arg7: memref<32x32xbf16, #tpu.memory_space<vmem>>, %arg8: memref<32x32xbf16, #tpu.memory_space<vmem>>, %arg9: memref<32x64xbf16, #tpu.memory_space<vmem>>, %arg10: memref<1x64xf32, #tpu.memory_space<vmem>>, %arg11: memref<64x32xbf16, #tpu.memory_space<vmem>>, %arg12: memref<1x32xf32, #tpu.memory_space<vmem>>, %arg13: memref<1x8x32xf32, #tpu.memory_space<vmem>>, %arg14: memref<8x32xf32, #tpu.memory_space<vmem>>, %arg15: memref<8x32xf32, #tpu.memory_space<vmem>>) attributes {dimension_semantics = [#tpu.dimension_semantics<parallel>, #tpu.dimension_semantics<parallel>, #tpu.dimension_semantics<arbitrary>], iteration_bounds = array<i64: 2, 1, 1>, scalar_prefetch = 0 : i64, scratch_operands = 2 : i64, tpu.core_type = #tpu.core_type<tc>, window_params = [{transform_indices = @transform_0, window_bounds = array<i64: 1, 8, 32>}, {transform_indices = @transform_1, window_bounds = array<i64: 1, 8, 32>}, {pipeline_mode = #tpu.pipeline_mode<synchronous>, transform_indices = @transform_2, window_bounds = array<i64: 32, 32>}, {pipeline_mode = #tpu.pipeline_mode<synchronous>, transform_indices = @transform_3, window_bounds = array<i64: 32, 32>}, {pipeline_mode = #tpu.pipeline_mode<synchronous>, transform_indices = @transform_4, window_bounds = array<i64: 32, 32>}, {pipeline_mode = #tpu.pipeline_mode<synchronous>, transform_indices = @transform_5, window_bounds = array<i64: 32, 32>}, {transform_indices = @transform_6, window_bounds = array<i64: 32, 64>}, {transform_indices = @transform_7, window_bounds = array<i64: 1, 64>}, {transform_indices = @transform_8, window_bounds = array<i64: 64, 32>}, {pipeline_mode = #tpu.pipeline_mode<synchronous>, transform_indices = @transform_9, window_bounds = array<i64: 1, 32>}, {transform_indices = @transform_10, window_bounds = array<i64: 1, 8, 32>}]} {
    %c0_i32 = arith.constant 0 : i32
    %0 = arith.cmpi eq, %arg2, %c0_i32 : i32
    %1 = arith.extui %0 : i1 to i32
    %c0_i32_0 = arith.constant 0 : i32
    %2 = arith.cmpi ne, %1, %c0_i32_0 : i32
    scf.if %2 {
      %c0_16 = arith.constant 0 : index
      %c0_17 = arith.constant 0 : index
      %c0_18 = arith.constant 0 : index
      %21 = vector.load %arg3[%c0_16, %c0_17, %c0_18] : memref<1x8x32xf32, #tpu.memory_space<vmem>>, vector<1x8x32xf32>
      %22 = vector.shape_cast %21 : vector<1x8x32xf32> to vector<8x32xf32>
      %c0_19 = arith.constant 0 : index
      %c0_20 = arith.constant 0 : index
      %c0_21 = arith.constant 0 : index
      %23 = vector.load %arg4[%c0_19, %c0_20, %c0_21] : memref<1x8x32xf32, #tpu.memory_space<vmem>>, vector<1x8x32xf32>
      %24 = vector.shape_cast %23 : vector<1x8x32xf32> to vector<8x32xf32>
      %25 = arith.truncf %22 : vector<8x32xf32> to vector<8x32xbf16>
      %26 = arith.truncf %24 : vector<8x32xf32> to vector<8x32xbf16>
      %c0_22 = arith.constant 0 : index
      %c0_23 = arith.constant 0 : index
      %27 = vector.load %arg5[%c0_22, %c0_23] : memref<32x32xbf16, #tpu.memory_space<vmem>>, vector<32x32xbf16>
      %cst_24 = arith.constant dense<0.000000e+00> : vector<8x32xf32>
      %28 = tpu.matmul %25, %27, %cst_24 {dimension_numbers = #tpu.dot_dimension_numbers<[1], [0], [0], [1], [0, 0, 1, 1], [], []>} : vector<8x32xbf16>, vector<32x32xbf16>, vector<8x32xf32> -> vector<8x32xf32>
      %c0_25 = arith.constant 0 : index
      %c0_26 = arith.constant 0 : index
      %29 = vector.load %arg6[%c0_25, %c0_26] : memref<32x32xbf16, #tpu.memory_space<vmem>>, vector<32x32xbf16>
      %cst_27 = arith.constant dense<0.000000e+00> : vector<8x32xf32>
      %30 = tpu.matmul %26, %29, %cst_27 {dimension_numbers = #tpu.dot_dimension_numbers<[1], [0], [0], [1], [0, 0, 1, 1], [], []>} : vector<8x32xbf16>, vector<32x32xbf16>, vector<8x32xf32> -> vector<8x32xf32>
      %c0_28 = arith.constant 0 : index
      %c0_29 = arith.constant 0 : index
      %31 = vector.load %arg7[%c0_28, %c0_29] : memref<32x32xbf16, #tpu.memory_space<vmem>>, vector<32x32xbf16>
      %cst_30 = arith.constant dense<0.000000e+00> : vector<8x32xf32>
      %32 = tpu.matmul %26, %31, %cst_30 {dimension_numbers = #tpu.dot_dimension_numbers<[1], [0], [0], [1], [0, 0, 1, 1], [], []>} : vector<8x32xbf16>, vector<32x32xbf16>, vector<8x32xf32> -> vector<8x32xf32>
      %33 = vector.extract_strided_slice %28 {offsets = [0, 0], sizes = [8, 8], strides = [1, 1]} : vector<8x32xf32> to vector<8x8xf32>
      %34 = arith.truncf %33 : vector<8x8xf32> to vector<8x8xbf16>
      %35 = vector.extract_strided_slice %30 {offsets = [0, 0], sizes = [8, 8], strides = [1, 1]} : vector<8x32xf32> to vector<8x8xf32>
      %36 = arith.truncf %35 : vector<8x8xf32> to vector<8x8xbf16>
      %37 = vector.extract_strided_slice %32 {offsets = [0, 0], sizes = [8, 8], strides = [1, 1]} : vector<8x32xf32> to vector<8x8xf32>
      %38 = arith.truncf %37 : vector<8x8xf32> to vector<8x8xbf16>
      %cst_31 = arith.constant dense<0.000000e+00> : vector<8x8xf32>
      %39 = tpu.matmul %34, %36, %cst_31 {dimension_numbers = #tpu.dot_dimension_numbers<[1], [1], [0], [0], [0, 0, 1, 0], [], []>} : vector<8x8xbf16>, vector<8x8xbf16>, vector<8x8xf32> -> vector<8x8xf32>
      %cst_32 = arith.constant dense<0xFF800000> : vector<8xf32>
      %40 = vector.multi_reduction <maximumf>, %39, %cst_32 [1] : vector<8x8xf32> to vector<8xf32>
      %41 = vector.shape_cast %40 : vector<8xf32> to vector<8x1xf32>
      %42 = vector.broadcast %41 : vector<8x1xf32> to vector<8x8xf32>
      %43 = arith.subf %39, %42 : vector<8x8xf32>
      %44 = math.exp %43 : vector<8x8xf32>
      %cst_33 = arith.constant dense<0.000000e+00> : vector<8xf32>
      %45 = vector.multi_reduction <add>, %44, %cst_33 [1] : vector<8x8xf32> to vector<8xf32>
      %46 = vector.shape_cast %45 : vector<8xf32> to vector<8x1xf32>
      %47 = tpu.reciprocal %46 {approx = true} : vector<8x1xf32> -> vector<8x1xf32>
      %48 = vector.broadcast %47 : vector<8x1xf32> to vector<8x8xf32>
      %49 = arith.mulf %44, %48 : vector<8x8xf32>
      %50 = arith.truncf %49 : vector<8x8xf32> to vector<8x8xbf16>
      %cst_34 = arith.constant dense<0.000000e+00> : vector<8x8xf32>
      %51 = tpu.matmul %50, %38, %cst_34 {dimension_numbers = #tpu.dot_dimension_numbers<[1], [0], [0], [1], [0, 0, 1, 1], [], []>} : vector<8x8xbf16>, vector<8x8xbf16>, vector<8x8xf32> -> vector<8x8xf32>
      %52 = vector.extract_strided_slice %28 {offsets = [0, 8], sizes = [8, 8], strides = [1, 1]} : vector<8x32xf32> to vector<8x8xf32>
      %53 = arith.truncf %52 : vector<8x8xf32> to vector<8x8xbf16>
      %54 = vector.extract_strided_slice %30 {offsets = [0, 8], sizes = [8, 8], strides = [1, 1]} : vector<8x32xf32> to vector<8x8xf32>
      %55 = arith.truncf %54 : vector<8x8xf32> to vector<8x8xbf16>
      %56 = vector.extract_strided_slice %32 {offsets = [0, 8], sizes = [8, 8], strides = [1, 1]} : vector<8x32xf32> to vector<8x8xf32>
      %57 = arith.truncf %56 : vector<8x8xf32> to vector<8x8xbf16>
      %cst_35 = arith.constant dense<0.000000e+00> : vector<8x8xf32>
      %58 = tpu.matmul %53, %55, %cst_35 {dimension_numbers = #tpu.dot_dimension_numbers<[1], [1], [0], [0], [0, 0, 1, 0], [], []>} : vector<8x8xbf16>, vector<8x8xbf16>, vector<8x8xf32> -> vector<8x8xf32>
      %cst_36 = arith.constant dense<0xFF800000> : vector<8xf32>
      %59 = vector.multi_reduction <maximumf>, %58, %cst_36 [1] : vector<8x8xf32> to vector<8xf32>
      %60 = vector.shape_cast %59 : vector<8xf32> to vector<8x1xf32>
      %61 = vector.broadcast %60 : vector<8x1xf32> to vector<8x8xf32>
      %62 = arith.subf %58, %61 : vector<8x8xf32>
      %63 = math.exp %62 : vector<8x8xf32>
      %cst_37 = arith.constant dense<0.000000e+00> : vector<8xf32>
      %64 = vector.multi_reduction <add>, %63, %cst_37 [1] : vector<8x8xf32> to vector<8xf32>
      %65 = vector.shape_cast %64 : vector<8xf32> to vector<8x1xf32>
      %66 = tpu.reciprocal %65 {approx = true} : vector<8x1xf32> -> vector<8x1xf32>
      %67 = vector.broadcast %66 : vector<8x1xf32> to vector<8x8xf32>
      %68 = arith.mulf %63, %67 : vector<8x8xf32>
      %69 = arith.truncf %68 : vector<8x8xf32> to vector<8x8xbf16>
      %cst_38 = arith.constant dense<0.000000e+00> : vector<8x8xf32>
      %70 = tpu.matmul %69, %57, %cst_38 {dimension_numbers = #tpu.dot_dimension_numbers<[1], [0], [0], [1], [0, 0, 1, 1], [], []>} : vector<8x8xbf16>, vector<8x8xbf16>, vector<8x8xf32> -> vector<8x8xf32>
      %71 = vector.extract_strided_slice %28 {offsets = [0, 16], sizes = [8, 8], strides = [1, 1]} : vector<8x32xf32> to vector<8x8xf32>
      %72 = arith.truncf %71 : vector<8x8xf32> to vector<8x8xbf16>
      %73 = vector.extract_strided_slice %30 {offsets = [0, 16], sizes = [8, 8], strides = [1, 1]} : vector<8x32xf32> to vector<8x8xf32>
      %74 = arith.truncf %73 : vector<8x8xf32> to vector<8x8xbf16>
      %75 = vector.extract_strided_slice %32 {offsets = [0, 16], sizes = [8, 8], strides = [1, 1]} : vector<8x32xf32> to vector<8x8xf32>
      %76 = arith.truncf %75 : vector<8x8xf32> to vector<8x8xbf16>
      %cst_39 = arith.constant dense<0.000000e+00> : vector<8x8xf32>
      %77 = tpu.matmul %72, %74, %cst_39 {dimension_numbers = #tpu.dot_dimension_numbers<[1], [1], [0], [0], [0, 0, 1, 0], [], []>} : vector<8x8xbf16>, vector<8x8xbf16>, vector<8x8xf32> -> vector<8x8xf32>
      %cst_40 = arith.constant dense<0xFF800000> : vector<8xf32>
      %78 = vector.multi_reduction <maximumf>, %77, %cst_40 [1] : vector<8x8xf32> to vector<8xf32>
      %79 = vector.shape_cast %78 : vector<8xf32> to vector<8x1xf32>
      %80 = vector.broadcast %79 : vector<8x1xf32> to vector<8x8xf32>
      %81 = arith.subf %77, %80 : vector<8x8xf32>
      %82 = math.exp %81 : vector<8x8xf32>
      %cst_41 = arith.constant dense<0.000000e+00> : vector<8xf32>
      %83 = vector.multi_reduction <add>, %82, %cst_41 [1] : vector<8x8xf32> to vector<8xf32>
      %84 = vector.shape_cast %83 : vector<8xf32> to vector<8x1xf32>
      %85 = tpu.reciprocal %84 {approx = true} : vector<8x1xf32> -> vector<8x1xf32>
      %86 = vector.broadcast %85 : vector<8x1xf32> to vector<8x8xf32>
      %87 = arith.mulf %82, %86 : vector<8x8xf32>
      %88 = arith.truncf %87 : vector<8x8xf32> to vector<8x8xbf16>
      %cst_42 = arith.constant dense<0.000000e+00> : vector<8x8xf32>
      %89 = tpu.matmul %88, %76, %cst_42 {dimension_numbers = #tpu.dot_dimension_numbers<[1], [0], [0], [1], [0, 0, 1, 1], [], []>} : vector<8x8xbf16>, vector<8x8xbf16>, vector<8x8xf32> -> vector<8x8xf32>
      %90 = vector.extract_strided_slice %28 {offsets = [0, 24], sizes = [8, 8], strides = [1, 1]} : vector<8x32xf32> to vector<8x8xf32>
      %91 = arith.truncf %90 : vector<8x8xf32> to vector<8x8xbf16>
      %92 = vector.extract_strided_slice %30 {offsets = [0, 24], sizes = [8, 8], strides = [1, 1]} : vector<8x32xf32> to vector<8x8xf32>
      %93 = arith.truncf %92 : vector<8x8xf32> to vector<8x8xbf16>
      %94 = vector.extract_strided_slice %32 {offsets = [0, 24], sizes = [8, 8], strides = [1, 1]} : vector<8x32xf32> to vector<8x8xf32>
      %95 = arith.truncf %94 : vector<8x8xf32> to vector<8x8xbf16>
      %cst_43 = arith.constant dense<0.000000e+00> : vector<8x8xf32>
      %96 = tpu.matmul %91, %93, %cst_43 {dimension_numbers = #tpu.dot_dimension_numbers<[1], [1], [0], [0], [0, 0, 1, 0], [], []>} : vector<8x8xbf16>, vector<8x8xbf16>, vector<8x8xf32> -> vector<8x8xf32>
      %cst_44 = arith.constant dense<0xFF800000> : vector<8xf32>
      %97 = vector.multi_reduction <maximumf>, %96, %cst_44 [1] : vector<8x8xf32> to vector<8xf32>
      %98 = vector.shape_cast %97 : vector<8xf32> to vector<8x1xf32>
      %99 = vector.broadcast %98 : vector<8x1xf32> to vector<8x8xf32>
      %100 = arith.subf %96, %99 : vector<8x8xf32>
      %101 = math.exp %100 : vector<8x8xf32>
      %cst_45 = arith.constant dense<0.000000e+00> : vector<8xf32>
      %102 = vector.multi_reduction <add>, %101, %cst_45 [1] : vector<8x8xf32> to vector<8xf32>
      %103 = vector.shape_cast %102 : vector<8xf32> to vector<8x1xf32>
      %104 = tpu.reciprocal %103 {approx = true} : vector<8x1xf32> -> vector<8x1xf32>
      %105 = vector.broadcast %104 : vector<8x1xf32> to vector<8x8xf32>
      %106 = arith.mulf %101, %105 : vector<8x8xf32>
      %107 = arith.truncf %106 : vector<8x8xf32> to vector<8x8xbf16>
      %cst_46 = arith.constant dense<0.000000e+00> : vector<8x8xf32>
      %108 = tpu.matmul %107, %95, %cst_46 {dimension_numbers = #tpu.dot_dimension_numbers<[1], [0], [0], [1], [0, 0, 1, 1], [], []>} : vector<8x8xbf16>, vector<8x8xbf16>, vector<8x8xf32> -> vector<8x8xf32>
      %109 = tpu.concatenate %51, %70, %89, %108 in 1 : vector<8x8xf32>, vector<8x8xf32>, vector<8x8xf32>, vector<8x8xf32> -> vector<8x32xf32>
      %110 = arith.truncf %109 : vector<8x32xf32> to vector<8x32xbf16>
      %c0_47 = arith.constant 0 : index
      %c0_48 = arith.constant 0 : index
      %111 = vector.load %arg8[%c0_47, %c0_48] : memref<32x32xbf16, #tpu.memory_space<vmem>>, vector<32x32xbf16>
      %cst_49 = arith.constant dense<0.000000e+00> : vector<8x32xf32>
      %112 = tpu.matmul %110, %111, %cst_49 {dimension_numbers = #tpu.dot_dimension_numbers<[1], [0], [0], [1], [0, 0, 1, 1], [], []>} : vector<8x32xbf16>, vector<32x32xbf16>, vector<8x32xf32> -> vector<8x32xf32>
      %113 = arith.addf %22, %112 : vector<8x32xf32>
      %c0_50 = arith.constant 0 : index
      %c0_51 = arith.constant 0 : index
      %114 = vector.load %arg14[%c0_50, %c0_51] : memref<8x32xf32, #tpu.memory_space<vmem>>, vector<8x32xf32>
      tpu.vector_store %arg14[%c0_50, %c0_51], %113 {strides = array<i32>} : memref<8x32xf32, #tpu.memory_space<vmem>>, vector<8x32xf32>,
      %cst_52 = arith.constant 0.000000e+00 : f32
      %115 = vector.broadcast %cst_52 : f32 to vector<8x32xf32>
      %c0_53 = arith.constant 0 : index
      %c0_54 = arith.constant 0 : index
      %116 = vector.load %arg15[%c0_53, %c0_54] : memref<8x32xf32, #tpu.memory_space<vmem>>, vector<8x32xf32>
      tpu.vector_store %arg15[%c0_53, %c0_54], %115 {strides = array<i32>} : memref<8x32xf32, #tpu.memory_space<vmem>>, vector<8x32xf32>,
    } else {
    }
    %c0 = arith.constant 0 : index
    %c0_1 = arith.constant 0 : index
    %3 = vector.load %arg14[%c0, %c0_1] : memref<8x32xf32, #tpu.memory_space<vmem>>, vector<8x32xf32>
    %4 = arith.truncf %3 : vector<8x32xf32> to vector<8x32xbf16>
    %c0_2 = arith.constant 0 : index
    %c0_3 = arith.constant 0 : index
    %5 = vector.load %arg9[%c0_2, %c0_3] : memref<32x64xbf16, #tpu.memory_space<vmem>>, vector<32x64xbf16>
    %cst = arith.constant dense<0.000000e+00> : vector<8x64xf32>
    %6 = tpu.matmul %4, %5, %cst {dimension_numbers = #tpu.dot_dimension_numbers<[1], [0], [0], [1], [0, 0, 1, 1], [], []>} : vector<8x32xbf16>, vector<32x64xbf16>, vector<8x64xf32> -> vector<8x64xf32>
    %c0_4 = arith.constant 0 : index
    %c0_5 = arith.constant 0 : index
    %7 = vector.load %arg10[%c0_4, %c0_5] : memref<1x64xf32, #tpu.memory_space<vmem>>, vector<1x64xf32>
    %8 = vector.broadcast %7 : vector<1x64xf32> to vector<8x64xf32>
    %9 = arith.addf %6, %8 : vector<8x64xf32>
    %cst_6 = arith.constant 0.000000e+00 : f32
    %10 = vector.broadcast %cst_6 : f32 to vector<8x64xf32>
    %11 = arith.maximumf %9, %10 : vector<8x64xf32>
    %c0_7 = arith.constant 0 : index
    %c0_8 = arith.constant 0 : index
    %12 = vector.load %arg15[%c0_7, %c0_8] : memref<8x32xf32, #tpu.memory_space<vmem>>, vector<8x32xf32>
    %13 = arith.truncf %11 : vector<8x64xf32> to vector<8x64xbf16>
    %c0_9 = arith.constant 0 : index
    %c0_10 = arith.constant 0 : index
    %14 = vector.load %arg11[%c0_9, %c0_10] : memref<64x32xbf16, #tpu.memory_space<vmem>>, vector<64x32xbf16>
    %cst_11 = arith.constant dense<0.000000e+00> : vector<8x32xf32>
    %15 = tpu.matmul %13, %14, %cst_11 {dimension_numbers = #tpu.dot_dimension_numbers<[1], [0], [0], [1], [0, 0, 1, 1], [], []>} : vector<8x64xbf16>, vector<64x32xbf16>, vector<8x32xf32> -> vector<8x32xf32>
    %16 = arith.addf %12, %15 : vector<8x32xf32>
    %c0_12 = arith.constant 0 : index
    %c0_13 = arith.constant 0 : index
    %17 = vector.load %arg15[%c0_12, %c0_13] : memref<8x32xf32, #tpu.memory_space<vmem>>, vector<8x32xf32>
    tpu.vector_store %arg15[%c0_12, %c0_13], %16 {strides = array<i32>} : memref<8x32xf32, #tpu.memory_space<vmem>>, vector<8x32xf32>,
    %c0_i32_14 = arith.constant 0 : i32
    %18 = arith.cmpi eq, %arg2, %c0_i32_14 : i32
    %19 = arith.extui %18 : i1 to i32
    %c0_i32_15 = arith.constant 0 : i32
    %20 = arith.cmpi ne, %19, %c0_i32_15 : i32
    scf.if %20 {
      %c0_16 = arith.constant 0 : index
      %c0_17 = arith.constant 0 : index
      %21 = vector.load %arg14[%c0_16, %c0_17] : memref<8x32xf32, #tpu.memory_space<vmem>>, vector<8x32xf32>
      %c0_18 = arith.constant 0 : index
      %c0_19 = arith.constant 0 : index
      %22 = vector.load %arg15[%c0_18, %c0_19] : memref<8x32xf32, #tpu.memory_space<vmem>>, vector<8x32xf32>
      %23 = arith.addf %21, %22 : vector<8x32xf32>
      %c0_20 = arith.constant 0 : index
      %c0_21 = arith.constant 0 : index
      %24 = vector.load %arg12[%c0_20, %c0_21] : memref<1x32xf32, #tpu.memory_space<vmem>>, vector<1x32xf32>
      %25 = vector.broadcast %24 : vector<1x32xf32> to vector<8x32xf32>
      %26 = arith.addf %23, %25 : vector<8x32xf32>
      %c0_22 = arith.constant 0 : index
      %c0_23 = arith.constant 0 : index
      %c0_24 = arith.constant 0 : index
      %27 = vector.load %arg13[%c0_22, %c0_23, %c0_24] : memref<1x8x32xf32, #tpu.memory_space<vmem>>, vector<1x8x32xf32>
      %28 = vector.shape_cast %27 : vector<1x8x32xf32> to vector<8x32xf32>
      %29 = vector.shape_cast %26 : vector<8x32xf32> to vector<1x8x32xf32>
      tpu.vector_store %arg13[%c0_22, %c0_23, %c0_24], %29 {strides = array<i32>} : memref<1x8x32xf32, #tpu.memory_space<vmem>>, vector<1x8x32xf32>,
    } else {
    }
    return
  }
  func.func @transform_0(%arg0: i32, %arg1: i32, %arg2: i32) -> (i32, i32, i32) {
    %c0_i32 = arith.constant 0 : i32
    %c0_i32_0 = arith.constant 0 : i32
    return %arg0, %arg1, %c0_i32 : i32, i32, i32
  }
  func.func @transform_1(%arg0: i32, %arg1: i32, %arg2: i32) -> (i32, i32, i32) {
    %c0_i32 = arith.constant 0 : i32
    %c0_i32_0 = arith.constant 0 : i32
    %c0_i32_1 = arith.constant 0 : i32
    return %arg0, %c0_i32, %c0_i32_0 : i32, i32, i32
  }
  func.func @transform_2(%arg0: i32, %arg1: i32, %arg2: i32) -> (i32, i32) {
    %c0_i32 = arith.constant 0 : i32
    %c0_i32_0 = arith.constant 0 : i32
    %c0_i32_1 = arith.constant 0 : i32
    return %c0_i32, %c0_i32_0 : i32, i32
  }
  func.func @transform_3(%arg0: i32, %arg1: i32, %arg2: i32) -> (i32, i32) {
    %c0_i32 = arith.constant 0 : i32
    %c0_i32_0 = arith.constant 0 : i32
    %c0_i32_1 = arith.constant 0 : i32
    return %c0_i32, %c0_i32_0 : i32, i32
  }
  func.func @transform_4(%arg0: i32, %arg1: i32, %arg2: i32) -> (i32, i32) {
    %c0_i32 = arith.constant 0 : i32
    %c0_i32_0 = arith.constant 0 : i32
    %c0_i32_1 = arith.constant 0 : i32
    return %c0_i32, %c0_i32_0 : i32, i32
  }
  func.func @transform_5(%arg0: i32, %arg1: i32, %arg2: i32) -> (i32, i32) {
    %c0_i32 = arith.constant 0 : i32
    %c0_i32_0 = arith.constant 0 : i32
    %c0_i32_1 = arith.constant 0 : i32
    return %c0_i32, %c0_i32_0 : i32, i32
  }
  func.func @transform_6(%arg0: i32, %arg1: i32, %arg2: i32) -> (i32, i32) {
    %c0_i32 = arith.constant 0 : i32
    %c0_i32_0 = arith.constant 0 : i32
    return %c0_i32, %arg2 : i32, i32
  }
  func.func @transform_7(%arg0: i32, %arg1: i32, %arg2: i32) -> (i32, i32) {
    %c0_i32 = arith.constant 0 : i32
    %c0_i32_0 = arith.constant 0 : i32
    return %c0_i32, %arg2 : i32, i32
  }
  func.func @transform_8(%arg0: i32, %arg1: i32, %arg2: i32) -> (i32, i32) {
    %c0_i32 = arith.constant 0 : i32
    %c0_i32_0 = arith.constant 0 : i32
    return %arg2, %c0_i32 : i32, i32
  }
  func.func @transform_9(%arg0: i32, %arg1: i32, %arg2: i32) -> (i32, i32) {
    %c0_i32 = arith.constant 0 : i32
    %c0_i32_0 = arith.constant 0 : i32
    %c0_i32_1 = arith.constant 0 : i32
    return %c0_i32, %c0_i32_0 : i32, i32
  }
  func.func @transform_10(%arg0: i32, %arg1: i32, %arg2: i32) -> (i32, i32, i32) {
    %c0_i32 = arith.constant 0 : i32
    %c0_i32_0 = arith.constant 0 : i32
    return %arg0, %arg1, %c0_i32 : i32, i32, i32
  }
}

</mosaic_0001>

<bundles_post_ra>
// kernel: tpu_custom_call.1
= control target key start
LH: loop header
LB: loop body
LE: loop exit
PB: predicated region body
PF: predicated region fallthrough
CT: control target
= control target key end

     0   :  { %s1905_s0 = inlined_call_operand.vmem [shape: f32[2,8,32], index: 0, kind: input, shape index: {}]   ;;  %s1906_s1 = inlined_call_operand.vmem [shape: f32[2,8,32], index: 1, kind: input, shape index: {}]   ;;  %s1907_s2 = inlined_call_operand.vmem [shape: bf16[32,32], index: 2, kind: input, shape index: {}]   ;;  %s1908_s3 = inlined_call_operand.hbm [shape: bf16[32,32], index: 3, kind: input, shape index: {}]   ;;  %s1909_s4 = inlined_call_operand.hbm [shape: bf16[32,32], index: 4, kind: input, shape index: {}]   ;;  %s1910_s5 = inlined_call_operand.hbm [shape: bf16[32,32], index: 5, kind: input, shape index: {}]   ;;  %s1911_s6 = inlined_call_operand.hbm [shape: bf16[32,64], index: 6, kind: input, shape index: {}]   ;;  %s1912_s7 = inlined_call_operand.vmem [shape: f32[1,64], index: 7, kind: input, shape index: {}]   ;;  %s1913_s8 = inlined_call_operand.vmem [shape: bf16[64,32], index: 8, kind: input, shape index: {}]   ;;  %s1914_s9 = inlined_call_operand.vmem [shape: f32[1,32], index: 9, kind: input, shape index: {}]   ;;  %s1915_s10 = inlined_call_operand.hbm [shape: f32[2,8,32], index: 10, kind: output, shape index: {}]  }
   0x1   :  { %1923 = sst [smem:[#allocation24_spill]] %s1909_s4 }
   0x2   :  { %15 = vsyncpa [#allocation5], 0 }
   0x3   :  { %16 = vsyncpa [#allocation8], 0 }
   0x4   :  { %17 = vsyncpa [#allocation11], 0 }
   0x5   :  { %18 = vsyncpa [#allocation6], 0 }
   0x6   :  { %20 = vsyncpa [#allocation6 + $0x1], 0  ;;  %s1683_s13 = smov 0   ;;  %s1685_s14 = smov 0  }
   0x7   :  { %s1687_s15 = smov 0   ;;  %s1689_s16 = smov 0  }
   0x8   :  { %s1691_s17 = smov 0   ;;  %s1693_s18 = smov 0  }
   0x9 LB: > { %1924 = sst [smem:[#allocation17_spill]] %s1593_s13  ;;  %s1174_s19 = sadd.s32 4294967295, %s1613_s18   ;;  %s1613_s18 = sphi %s1693_s18, %s26_s18   ;;  %s1609_s17 = sphi %s1691_s17, %s1943_s17   ;;  %s1605_s16 = sphi %s1689_s16, %s1942_s16   ;;  %s1601_s15 = sphi %s1687_s15, %s1941_s15   ;;  %s1597_s14 = sphi %s1685_s14, %s1945_s14   ;;  %s1593_s13 = sphi %s1683_s13, %s1944_s13  }
   0xa   : > { %1925 = sst [smem:[#allocation18_spill]] %s1601_s15  ;;  %s1175_s20 = sadd.s32 4294967294, %s1613_s18  }
   0xb   : > { %1926 = sst [smem:[#allocation19_spill]] %s1609_s17  ;;  %s45_s21 = sadd.s32 1, %s1609_s17 }
   0xc   : > { %1927 = sst [smem:[#allocation20_spill]] %s1613_s18  ;;  %s291_s22 = sadd.s32 1, %s1601_s15 }
   0xd   : > { %p47_p0 = scmp.ge.s32.totalorder %s45_s21, 2  ;;  %p301_p1 = scmp.ne.s32.totalorder %s1601_s15, %s1597_s14 }
   0xe   : > { %p302_p2 = scmp.eq.s32.totalorder %s1174_s19, 1  ;;  %p307_p3 = scmp.ne.s32.totalorder %s1597_s14, %s1593_s13 }
   0xf   : > { %s1947_s21 = smov (%p47_p0, %s45_s21), 0  ;;  %p308_p5 = scmp.eq.s32.totalorder %s1175_s20, 1 }
  0x10   : > { %1928 = sst [smem:[#allocation21_spill]] %s1947_s21  ;;  %p1723_p4 = por %p302_p2, %p301_p1 }
  0x11   : > { %s286_s24 = ssub.s32 %s1609_s17, %s1947_s21  ;;  %p1176_p6 = scmp.ge.s32.totalorder %s1613_s18, 1 }
  0x12   : > { %p289_p7 = scmp.eq.s32.totalorder %s286_s24, 0  ;;  %p1730_p8 = por %p308_p5, %p307_p3 }
  0x13   : > { %p315_p9 = scmp.lt.s32.totalorder %s1613_s18, 3  ;;  %p1742_p11 = scmp.eq.s32.totalorder %s1174_s19, 0 }
  0x14   : > { %s1930_s25 = scalar_select %p1730_p8, 1, 0 }
  0x15   : > { %s1736_s26 = scalar_select %p289_p7, %s1601_s15, %s291_s22  }
  0x16   : > { %1931 = sst [smem:[#allocation22_spill]] %s1930_s25  ;;  %p1738_p10 = pnand %p1176_p6, %p315_p9 }
  0x17   : > { %1932 = sst [smem:[#allocation23_spill]] %s1736_s26  ;;  %s1615_s20 = smov [#allocation7]  }
  0x18   : > { %p1298_p12 = pneg %p1738_p10  ;;  %s1935_s4 = sld [smem:[#allocation24_spill]] }
  0x19   : > { %s345_s19 = sshll.u32 %s1615_s20, 4  ;;  %s1616_s22 = smov 64   ;;  %s346_s19 = int_to_ptr.vmem [resolvable:$true] %s345_s19 }
  0x1a   : > { %p1753_p13 = pnand %p1742_p11, %p1298_p12  ;;  %s1617_s24 = smov 4  }
  0x1b   : > { %s329_s29 = sshll.u32 %s1908_s3, 4  ;;  %s1618_s30 = smov [#allocation4]   ;;  %s330_s29 = int_to_ptr.hbm [resolvable:$true] %s329_s29 }
  0x1c   : > { %s357_s25 = sshll.u32 %s1910_s5, 4  ;;  %s1619_s20 = smov [#allocation9]   ;;  %s358_s25 = int_to_ptr.hbm [resolvable:$true] %s357_s25 }
  0x1d   : > { %s359_s13 = sshll.u32 %s1619_s20, 4  ;;  %s1620_s17 = smov [#allocation10]   ;;  %s360_s13 = int_to_ptr.vmem [resolvable:$true] %s359_s13 }
  0x1e   : > { %s343_s11 = sshll.u32 %s1935_s4, 4  ;;  %s331_s4 = sshll.u32 %s1618_s30, 4  ;;  %s344_s11 = int_to_ptr.hbm [resolvable:$true] %s343_s11  ;;  %s332_s4 = int_to_ptr.vmem [resolvable:$true] %s331_s4 }
  0x1f   : > { %1304 = dma.hbm_to_vmem [thread:$0]  (!%p1753_p13), %s344_s11, 256, %s346_s19, [#allocation8], %s1616_s22, %s1616_s22, %s1617_s24  }
  0x20   : > { %1301 = dma.hbm_to_vmem [thread:$0]  (!%p1753_p13), %s330_s29, 256, %s332_s4, [#allocation5], %s1616_s22, %s1616_s22, %s1617_s24  }
  0x21   : > { %s373_s19 = sshll.u32 %s1911_s6, 4  ;;  %s375_s21 = sshll.u32 %s1620_s17, 4  ;;  %s374_s19 = int_to_ptr.hbm [resolvable:$true] %s373_s19  ;;  %s376_s21 = int_to_ptr.vmem [resolvable:$true] %s375_s21 }
  0x22   : > { %1307 = dma.hbm_to_vmem [thread:$0]  (!%p1753_p13), %s358_s25, 256, %s360_s13, [#allocation8], %s1616_s22, %s1616_s22, %s1617_s24  }
  0x23   : > { %1310 = dma.hbm_to_vmem [thread:$0]  (!%p1753_p13), %s374_s19, 256, %s376_s21, [#allocation11], %s1616_s22, %s1616_s22, %s1617_s24  }
  0x24   : > { %426 = sbr.rel (%p1738_p10) target bundleno = 1394 (0x572), region = 60 }
  0x29   : > { %1576 = dma.done.wait (%p1742_p11), [#allocation5], 256  }
  0x2a   : > { %1578 = vsyncadd (%p1742_p11), [#allocation5], 4294967040 }
  0x2b   : > { %1580 = dma.done.wait (%p1742_p11), [#allocation8], 512  }
  0x2c   : > { %1582 = vsyncadd (%p1742_p11), [#allocation8], 4294966784 }
  0x2d   : > { %1584 = dma.done.wait (%p1742_p11), [#allocation11], 256  }
  0x2e   : > { %1586 = vsyncadd (%p1742_p11), [#allocation11], 4294967040  ;;  %p494_p0 = scmp.lt.s32.totalorder %s1605_s16, 1  ;;  %v1267_v0 = vld [vmem:[%s1907_s2 + $0x8] sm:$0xff]  ;;  %v1269_v1 = vld [vmem:[#allocation4 + $0x8] sm:$0xff]  ;;  %vm539_vm0 = vcmask 261120  }
  0x2f   : > { %v1266_v2 = vld [vmem:[%s1907_s2] sm:$0xff]  ;;  %v1268_v3 = vld [vmem:[#allocation4] sm:$0xff]  ;;  %549 = vmatpush.bf16.msra.mxu0 %v1267_v0  ;;  %581 = vmatpush.bf16.msra.mxu1 %v1269_v1  ;;  %vm620_vm1 = vcmask 64512   ;;  %s1621_s30 = smov 112   ;;  %s1622_s20 = smov 120   ;;  %v1271_v27 = vld [vmem:[#allocation7 + $0x8] sm:$0xff] }
  0x30   : > { %s495_s4 = scalar_select %p494_p0, %s1605_s16, 1  ;;  %610 = vmatpush.bf16.msra.mxu2 %v1271_v27  ;;  %v1270_v28 = vld [vmem:[#allocation7] sm:$0xff]  ;;  %vm655_vm2 = vcmask 1043456   ;;  %vm856_vm3 = vcmask 130048   ;;  %vm858_vm4 = vcmask 195584   ;;  %vm970_vm5 = vcmask 523264  }
  0x31   : > { %s1623_s11 = smov 104   ;;  %s1624_s19 = smov 8  }
  0x32   : > { %s1190_s13 = sshll.u32 %s495_s4, 3  ;;  %s1625_s17 = smov 24  }
  0x33   : > { %s500_s25 = scalar_lea.vmem %s1905_s0, %s1190_s13  ;;  %s504_s12 = scalar_lea.vmem %s1906_s1, %s1190_s13  ;;  %550 = vmatpush.bf16.msra.mxu0 %v1266_v2  ;;  %582 = vmatpush.bf16.msra.mxu1 %v1268_v3 }
  0x34   : > { %v1802_v4 = vld [vmem:[%s500_s25] sm:$0xff]  ;;  %611 = vmatpush.bf16.msra.mxu2 %v1270_v28  ;;  %s1626_s21 = smov 16   ;;  %s491_s28 = sand.u32 1, %s1597_s14  }
  0x35   : > { %v520_v5 = vld [vmem:[%s504_s12] sm:$0xff]  ;;  %v521_v6 = vpack.c.bf16 %v1802_v4, %v1802_v4  ;;  %s1189_s29 = sshll.u32 %s491_s28, 3  ;;  %s1543_s12 = scalar_lea.hbm %s1915_s10, 16 }
  0x36   : > { %v522_v7 = vpack.c.bf16 %v520_v5, %v520_v5  ;;  %s493_s4 = scalar_lea.vmem [#allocation12], %s1189_s29 }
  0x37   : > { %1200 = vmatmul.msk.bf16.vlgmr.msra.gmra.mxu0 %vm539_vm0, %v521_v6  ;;  %s1015_s13 = sshll.u32 %s493_s4, 4  ;;  %s1016_s13 = int_to_ptr.vmem [resolvable:$true] %s1015_s13 }
  0x38   : > { %1209 = vmatmul.msk.bf16.vlgmr.msra.gmra.mxu1 %vm539_vm0, %v522_v7  ;;  %1218 = vmatmul.msk.bf16.vlgmr.msra.gmra.mxu2 %vm539_vm0, %v522_v7 }
  0xb4   : > { %v552_v8 = vpop.f32.mrf.mxu0 }
  0xb5   : > { %v584_v9 = vpop.f32.mrf.mxu1  ;;  %v617_v10 = vpack.c.bf16 %v552_v8, %v552_v8 }
  0xb6   : > { %v618_v11 = vpack.c.bf16 %v584_v9, %v584_v9 }
  0xb7   : > { %731 = vrot.lane.b32.xlu2 %v617_v10, %s1621_s30 }
  0xb8   : > { %733 = vrot.lane.b32.xlu1 %v618_v11, %s1621_s30  ;;  %676 = vrot.lane.b32.xlu0 %v618_v11, %s1622_s20  ;;  %v625_v12 = vsel %vm620_vm1, %v618_v11, 0 }
  0xb9   : > { %634 = vmatpush.bf16.xpose.msra.mxu3 %v625_v12 }
  0xbb   : > { %v613_v43 = vpop.f32.mrf.mxu2 }
  0xbc   : > { %v554_v13 = vpop.f32.mrf.mxu0  ;;  %v619_v44 = vpack.c.bf16 %v613_v43, %v613_v43 }
  0xbd   : > { %v586_v14 = vpop.f32.mrf.mxu1 }
  0xbe   : > { %v657_v45 = vsel %vm655_vm2, %v619_v44, 0 }
  0xbf   : > { %787 = vrot.lane.b32.xlu2 %v617_v10, %s1623_s11  ;;  %666 = vmatpush.bf16.msrb.mxu0 %v657_v45 }
  0xc0   : > { %789 = vrot.lane.b32.xlu1 %v618_v11, %s1623_s11  ;;  %673 = vrot.lane.b32.xlu0 %v617_v10, %s1622_s20 }
  0xc1   : > { %1219 = vmatmul.msk.bf16.vlgmr.msra.gmra.mxu3 %vm620_vm1, %v617_v10 }
  0xc3   : > { %v615_v48 = vpop.f32.mrf.mxu2 }
  0xc4   : > { %v1276_v48 = vld [vmem:[%s1913_s8] sm:$0xff] }
 0x111   : > { %v732_v19 = vpop.permute.xlu2 %731 }
 0x119   : > { %v788_v23 = vpop.permute.xlu2 %787 }
 0x12a   : > { %v734_v15 = vpop.permute.xlu1 %733  ;;  %v677_v16 = vpop.permute.xlu0 %676 }
 0x12b   : > { %v682_v17 = vsel %vm620_vm1, %v677_v16, 0  ;;  %v739_v18 = vsel %vm620_vm1, %v734_v15, 0 }
 0x12c   : > { %691 = vmatpush.bf16.xpose.msrb.mxu1 %v682_v17  ;;  %748 = vmatpush.bf16.xpose.msrb.mxu3 %v739_v18 }
 0x132   : > { %v790_v20 = vpop.permute.xlu1 %789  ;;  %v674_v21 = vpop.permute.xlu0 %673 }
 0x133   : > { %v795_v22 = vsel %vm620_vm1, %v790_v20, 0  ;;  %1221 = vmatmul.msk.bf16.vlgmr.msrb.gmra.mxu1 %vm620_vm1, %v674_v21  ;;  %1223 = vmatmul.msk.bf16.vlgmr.msrb.gmra.mxu3 %vm620_vm1, %v732_v19 }
 0x134   : > { %804 = vmatpush.bf16.xpose.msra.mxu1 %v795_v22 }
 0x143   : > { %1225 = vmatmul.msk.bf16.vlgmr.msra.gmra.mxu1 %vm620_vm1, %v788_v23 }
 0x144   : > { %v636_v24 = vpop.f32.mrf.mxu3 }
 0x145   : > { %v640_v25 = vsel %vm620_vm1, %v636_v24, -inf }
 0x146   : > { %641 = vmax.xlane.f32.xlu1 %v640_v25 }
 0x14c   : > { %v638_v26 = vpop.f32.mrf.mxu3 }
 0x1b0   : > { %v693_v29 = vpop.f32.mrf.mxu1 }
 0x1b1   : > { %v697_v30 = vsel %vm620_vm1, %v693_v29, -inf }
 0x1b2   : > { %698 = vmax.xlane.f32.xlu0 %v697_v30  ;;  %v1272_v30 = vld [vmem:[#allocation9] sm:$0xff] }
 0x1b6   : > { %v750_v31 = vpop.f32.mrf.mxu3 }
 0x1b7   : > { %v754_v42 = vsel %vm620_vm1, %v750_v31, -inf }
 0x1b8   : > { %v695_v32 = vpop.f32.mrf.mxu1 }
 0x1b9   : > { %v642_v33 = vpop.xlane.xlu1 %641 }
 0x1ba   : > { %v643_v34 = vsub.f32 %v636_v24, %v642_v33 }
 0x1bc   : > { %v644_v35 = vmul.f32 1.442695, %v643_v34 }
 0x1be   : > { %1387 = vpow2.f32 %v644_v35  ;;  %v752_v36 = vpop.f32.mrf.mxu3 }
 0x1c0   : > { %v806_v37 = vpop.f32.mrf.mxu1 }
 0x1c1   : > { %v810_v38 = vsel %vm620_vm1, %v806_v37, -inf }
 0x1c2   : > { %811 = vmax.xlane.f32.xlu2 %v810_v38  ;;  %v1275_v38 = vld [vmem:[#allocation10 + $0x8] sm:$0xff] }
 0x1c4   : > { %v1388_v39 = vpop.eup %1387 }
 0x1c5   : > { %v646_v40 = vsel %vm620_vm1, %v1388_v39, 0.0 }
 0x1c6   : > { %647 = vadd.xlane.f32.xlu1 %v646_v40  ;;  %v1279_v40 = vld [vmem:[%s1913_s8 + $0x18] sm:$0xff] }
 0x1c7   : > { %978 = vmatpush.bf16.msrb.mxu1 %v1279_v40 }
 0x1c8   : > { %v808_v41 = vpop.f32.mrf.mxu1 }
 0x1c9   : > { %v1278_v41 = vld [vmem:[%s1913_s8 + $0x10] sm:$0xff] }
 0x1ca   : > { %755 = vmax.xlane.f32.xlu2 %v754_v42 }
 0x1cb   : > { %979 = vmatpush.bf16.msrb.mxu1 %v1278_v41 }
 0x1e2   : > { %710 = vrot.lane.b32.xlu2 %v619_v44, %s1622_s20 }
 0x225   : > { %v699_v46 = vpop.xlane.xlu0 %698 }
 0x226   : > { %v700_v47 = vsub.f32 %v693_v29, %v699_v46  ;;  %v1273_v29 = vld [vmem:[#allocation9 + $0x8] sm:$0xff] }
 0x227   : > { %886 = vmatpush.bf16.msra.mxu3 %v1273_v29 }
 0x228   : > { %v701_v49 = vmul.f32 1.442695, %v700_v47  ;;  %v1277_v47 = vld [vmem:[%s1913_s8 + $0x8] sm:$0xff] }
 0x229   : > { %980 = vmatpush.bf16.msrb.mxu1 %v1277_v47 }
 0x22a   : > { %1389 = vpow2.f32 %v701_v49  ;;  %v1627_v49 = vmov 0.0  }
 0x22b   : > { %887 = vmatpush.bf16.msra.mxu3 %v1272_v30  ;;  %895 = vst.msk [vmem:[#allocation3] sm:$0xff] %vm539_vm0, %v1627_v49 }
 0x22d   : > { %981 = vmatpush.bf16.msrb.mxu1 %v1276_v48 }
 0x230   : > { %v1390_v50 = vpop.eup %1389 }
 0x231   : > { %v703_v51 = vsel %vm620_vm1, %v1390_v50, 0.0 }
 0x232   : > { %704 = vadd.xlane.f32.xlu0 %v703_v51 }
 0x235   : > { %v812_v52 = vpop.xlane.xlu2 %811 }
 0x236   : > { %v813_v53 = vsub.f32 %v806_v37, %v812_v52 }
 0x238   : > { %v814_v54 = vmul.f32 1.442695, %v813_v53 }
 0x239   : > { %v648_v55 = vpop.xlane.xlu1 %647 }
 0x23a   : > { %1391 = vpow2.f32 %v814_v54 }
 0x23b   : > { %1393 = vrcp.f32 %v648_v55  ;;  %v936_v55 = vld [vmem:[#allocation3] sm:$0xff] }
 0x23d   : > { %v756_v56 = vpop.xlane.xlu2 %755 }
 0x23e   : > { %v757_v57 = vsub.f32 %v750_v31, %v756_v56 }
 0x240   : > { %v1392_v58 = vpop.eup %1391  ;;  %v758_v59 = vmul.f32 1.442695, %v757_v57 }
 0x241   : > { %v1394_v60 = vpop.eup %1393  ;;  %v816_v61 = vsel %vm620_vm1, %v1392_v58, 0.0 }
 0x242   : > { %v650_v62 = vmul.f32 %v1394_v60, %v1388_v39  ;;  %1395 = vpow2.f32 %v758_v59  ;;  %817 = vadd.xlane.f32.xlu0 %v816_v61  ;;  %v1274_v39 = vld [vmem:[#allocation10] sm:$0xff] }
 0x243   : > { %v1386_v59 = vld [vmem:[%s1914_s9] ss:$0 sm:$0xff] }
 0x244   : > { %v651_v63 = vpack.c.bf16 %v650_v62, %v650_v62 }
 0x245   : > { %v711_v2 = vpop.permute.xlu2 %710 }
 0x246   : > { %1220 = vmatmul.msk.bf16.vlgmr.msrb.gmra.mxu0 %vm620_vm1, %v651_v63  ;;  %v716_v3 = vsel %vm655_vm2, %v711_v2, 0 }
 0x247   : > { %725 = vmatpush.bf16.msrb.mxu2 %v716_v3 }
 0x248   : > { %v1396_v0 = vpop.eup %1395 }
 0x249   : > { %v760_v1 = vsel %vm620_vm1, %v1396_v0, 0.0 }
 0x24a   : > { %761 = vadd.xlane.f32.xlu1 %v760_v1 }
 0x256   : > { %822 = vrot.lane.b32.xlu0 %v619_v44, %s1623_s11 }
 0x263   : > { %766 = vrot.lane.b32.xlu1 %v619_v44, %s1621_s30  ;;  %s1263_s30 = sshll.u32 %s1605_s16, 3  ;;  %s1002_s16 = scalar_lea.sflag [#allocation6], %s491_s28 }
 0x2a5   : > { %v705_v5 = vpop.xlane.xlu0 %704 }
 0x2a6   : > { %1397 = vrcp.f32 %v705_v5 }
 0x2ac   : > { %v1398_v6 = vpop.eup %1397 }
 0x2ad   : > { %v707_v7 = vmul.f32 %v1398_v6, %v1390_v50 }
 0x2af   : > { %v708_v8 = vpack.c.bf16 %v707_v7, %v707_v7 }
 0x2b1   : > { %1222 = vmatmul.msk.bf16.vlgmr.msrb.gmra.mxu2 %vm620_vm1, %v708_v8 }
 0x2b5   : > { %v818_v9 = vpop.xlane.xlu0 %817 }
 0x2b6   : > { %1399 = vrcp.f32 %v818_v9 }
 0x2bc   : > { %v1400_v11 = vpop.eup %1399 }
 0x2bd   : > { %v820_v12 = vmul.f32 %v1400_v11, %v1392_v58  ;;  %v762_v13 = vpop.xlane.xlu1 %761 }
 0x2be   : > { %1401 = vrcp.f32 %v762_v13 }
 0x2bf   : > { %v821_v16 = vpack.c.bf16 %v820_v12, %v820_v12 }
 0x2c3   : > { %v668_v10 = vpop.f32.mrf.mxu0 }
 0x2c4   : > { %v1402_v18 = vpop.eup %1401 }
 0x2c5   : > { %v764_v19 = vmul.f32 %v1402_v18, %v1396_v0 }
 0x2c7   : > { %v765_v22 = vpack.c.bf16 %v764_v19, %v764_v19 }
 0x2c8   : > { %v823_v14 = vpop.permute.xlu0 %822 }
 0x2c9   : > { %v828_v15 = vsel %vm655_vm2, %v823_v14, 0 }
 0x2ca   : > { %837 = vmatpush.bf16.msra.mxu2 %v828_v15 }
 0x2cb   : > { %v670_v17 = vpop.f32.mrf.mxu0 }
 0x2cd   : > { %1226 = vmatmul.msk.bf16.vlgmr.msra.gmra.mxu2 %vm620_vm1, %v821_v16 }
 0x2d5   : > { %v767_v20 = vpop.permute.xlu1 %766 }
 0x2d6   : > { %v772_v21 = vsel %vm655_vm2, %v767_v20, 0 }
 0x2d7   : > { %781 = vmatpush.bf16.msra.mxu0 %v772_v21 }
 0x2da   : > { %1224 = vmatmul.msk.bf16.vlgmr.msra.gmra.mxu0 %vm620_vm1, %v765_v22 }
 0x2db   : > { %928 = vmatpush.bf16.msrb.mxu0 %v1275_v38 }
 0x2df   : > { %929 = vmatpush.bf16.msrb.mxu0 %v1274_v39 }
 0x334   : > { %v727_v23 = vpop.f32.mrf.mxu2 }
 0x335   : > { %844 = vrot.lane.b32.xlu2 %v727_v23, %s1624_s19  ;;  %s1013_s19 = scalar_lea.hbm %s1915_s10, %s1263_s30 }
 0x336   : > { %s1017_s15 = sshll.u32 %s1013_s19, 4  ;;  %s1018_s15 = int_to_ptr.hbm [resolvable:$true] %s1017_s15 }
 0x337   : > { %s1537_s18 = sshra.s32 %s1018_s15, 4  ;;  %s1538_s18 = int_to_ptr.hbm [resolvable:$true] %s1537_s18 }
 0x338   : > { %s1539_s25 = scalar_lea.hbm %s1538_s18, 8  ;;  %p1544_p5 = scmp.lt.s32.totalorder %s1538_s18, %s1915_s10 }
 0x339   : > { %p1540_p1 = scmp.ne.s32.totalorder %s1538_s18, %s1539_s25  ;;  %p1545_p6 = scmp.lt.s32.totalorder %s1543_s12, %s1539_s25 }
 0x33b   : > { %p1541_p2 = pnand %p1540_p1, %p1723_p4  ;;  %p1546_p7 = por %p1545_p6, %p1544_p5 }
 0x33c   : > { %v729_v24 = vpop.f32.mrf.mxu2 }
 0x33d   : > { %p1542_p3 = pneg %p1541_p2 }
 0x33f   : > { %p1547_p9 = pnand %p1546_p7, %p1542_p3 }
 0x350   : > { %v839_v25 = vpop.f32.mrf.mxu2 }
 0x351   : > { %852 = vrot.lane.b32.xlu2 %v839_v25, %s1625_s17 }
 0x357   : > { %v783_v26 = vpop.f32.mrf.mxu0 }
 0x358   : > { %v841_v27 = vpop.f32.mrf.mxu2  ;;  %848 = vrot.lane.b32.xlu0 %v783_v26, %s1626_s21 }
 0x35f   : > { %v785_v28 = vpop.f32.mrf.mxu0 }
 0x38f   : > { %v845_v31 = vpop.permute.xlu2 %844 }
 0x390   : > { %v855_v32 = vsel %vm620_vm1, %v668_v10, %v845_v31 }
 0x3ab   : > { %v853_v34 = vpop.permute.xlu2 %852 }
 0x3ca   : > { %v849_v33 = vpop.permute.xlu0 %848 }
 0x3cb   : > { %v857_v35 = vsel %vm856_vm3, %v855_v32, %v849_v33 }
 0x3cc   : > { %v859_v36 = vsel %vm858_vm4, %v857_v35, %v853_v34 }
 0x3cd   : > { %v860_v37 = vpack.c.bf16 %v859_v36, %v859_v36 }
 0x3cf   : > { %1235 = vmatmul.msk.bf16.vlgmr.msra.gmra.mxu3 %vm539_vm0, %v860_v37 }
 0x452   : > { %v889_v42 = vpop.f32.mrf.mxu3 }
 0x453   : > { %v893_v43 = vadd.f32 %v889_v42, %v1802_v4  ;;  %v1385_v4 = vld [vmem:[%s1912_s7] ss:$0 sm:$0xff] }
 0x455   : > { %894 = vst.msk [vmem:[#allocation2] sm:$0xff] %vm539_vm0, %v893_v43 }
 0x45a   : > { %v891_v44 = vpop.f32.mrf.mxu3 }
 0x45c   : > { %v896_v45 = vld [vmem:[#allocation2] sm:$0xff] }
 0x45d   : > { %v897_v46 = vpack.c.bf16 %v896_v45, %v896_v45 }
 0x45f   : > { %1244 = vmatmul.msk.bf16.vlgmr.msrb.gmra.mxu0 %vm539_vm0, %v897_v46 }
 0x4dc   : > { %v931_v50 = vpop.f32.mrf.mxu0 }
 0x4dd   : > { %v932_v51 = vadd.f32 %v1385_v4, %v931_v50 }
 0x4df   : > { %v935_v52 = vmax.f32 %v932_v51, 0.0 }
 0x4e1   : > { %v937_v53 = vpack.c.bf16 %v935_v52, %v935_v52 }
 0x4e3   : > { %1261 = vmatmul.msk.bf16.vlgmr.msrb.gmra.mxu1 %vm970_vm5, %v937_v53 }
 0x4e4   : > { %v933_v54 = vpop.f32.mrf.mxu0 }
 0x560   : > { %v983_v56 = vpop.f32.mrf.mxu1 }
 0x561   : > { %v987_v57 = vadd.f32 %v983_v56, %v936_v55 }
 0x563   : > { %988 = vst.msk [vmem:[#allocation3] sm:$0xff] %vm539_vm0, %v987_v57 }
 0x568   : > { %v985_v58 = vpop.f32.mrf.mxu1 }
 0x56a   : > { %v993_v60 = vld [vmem:[#allocation3] sm:$0xff] }
 0x56b   : > { %v994_v61 = vadd.f32 %v993_v60, %v896_v45 }
 0x56d   : > { %v999_v62 = vadd.f32 %v1386_v59, %v994_v61 }
 0x56f   : > { %1000 = vst.msk [vmem:[%s493_s4] sm:$0xff] %vm539_vm0, %v999_v62 }
 0x570   : > { %1550 = shalt.err (!%p1547_p9)
}
 0x571   : > { %1296 = dma.vmem_to_hbm [thread:$0]  (%p1723_p4), %s1016_s13, 128, %s1018_s15, %s1002_s16  }
 0x572 PF: > { %s1937_s28 = sld [smem:[#allocation20_spill]] }
 0x573   : > { %s1938_s29 = sld [smem:[#allocation17_spill]] }
 0x578   : > { %p1323_p10 = scmp.ge.s32.totalorder %s1937_s28, 2 }
 0x579   : > { %s1029_s20 = sand.u32 1, %s1938_s29  }
 0x57a   : > { %p1312_p11 = pnand %p1323_p10, %p1730_p8  ;;  %s1030_s11 = scalar_lea.sflag [#allocation6], %s1029_s20 }
 0x57c   : > { %p1313_p12 = pneg %p1312_p11 }
 0x57e   : > { %1588 = dma.done.wait (%p1313_p12), %s1030_s11, 128  }
 0x57f   : > { %1590 = vsyncadd (%p1313_p12), %s1030_s11, 4294967168  ;;  %s26_s18 = sadd.s32 1, %s1937_s28   ;;  %s1940_s19 = sld [smem:[#allocation18_spill]] }
 0x580   : > { %p23_p13 = scmp.ge.s32.totalorder %s26_s18, 4   ;;  %s1941_s15 = sld [smem:[#allocation23_spill]] }
 0x581   : > { %s1942_s16 = sld [smem:[#allocation19_spill]]  ;;  %s1944_s13 = smov %s1597_s14 }
 0x582   : > { %s1943_s17 = sld [smem:[#allocation21_spill]]  ;;  %25 = sbr.rel (!%p23_p13) target bundleno = 9 (0x9), region = 130 }
 0x585   : > { %s1945_s14 = smov %s1940_s19 }
 0x587   :  { %1036 = vsyncpa [#allocation5], 1 }
 0x588   :  { %1038 = vsyncpa [#allocation5 + $0x1], 1 }
 0x589   :  { %1039 = vsyncpa [#allocation8], 1 }
 0x58a   :  { %1040 = vsyncpa [#allocation11], 1 }
 0x58b   :  { %1041 = vsyncpa [#allocation6], 1 }
 0x58c   :  { %1043 = vsyncpa [#allocation6 + $0x1], 1 }

</bundles_post_ra>
